<compile_context>
chip_gen: v5e
topology: v5e:2x2
jax: 0.10.0
libtpu: 0.0.40
codegen_flags: <defaults>
</compile_context>

<pallas_src>
import functools

import jax
import jax.numpy as jnp
from jax.experimental import pallas as pl
from jax.experimental.pallas import tpu as pltpu

_LANE = 128
_SUBLANE = 8
_X_STREAM_BUDGET = 8 << 20   # double-buffered x tiles (fits v5e 16 MiB scoped default)
_W_TILE_BUDGET = 4 << 20     # VMEM-resident replicated weight tile


def _round_up(x, m):
    return ((x + m - 1) // m) * m


# --------------------------------------------------------------------------
# Kernels
# --------------------------------------------------------------------------
def _flat_kernel(x_ref, w_ref, b_ref, o_ref, acc_ref, *, n_nodes):
    # x_ref: (TB, TK) lane-dense node features (nodes folded into K = N*D)
    # w_ref: (TK, F) node-replicated weight tile (constant index map -> resident)
    # b_ref: (1, F); o_ref: (TB, F); acc_ref: (TB, F) f32 accumulator.
    k = pl.program_id(1)

    @pl.when(k == 0)
    def _():
        acc_ref[...] = jnp.zeros_like(acc_ref)

    # Node sum is folded into the MXU contraction; f32 accumulation.
    acc_ref[...] += jnp.dot(x_ref[...], w_ref[...],
                            preferred_element_type=jnp.float32)

    @pl.when(k == pl.num_programs(1) - 1)
    def _():
        o_ref[...] = (acc_ref[...]
                      + float(n_nodes) * b_ref[...].astype(jnp.float32)
                      ).astype(o_ref.dtype)


def _reduce_kernel(x_ref, w_ref, b_ref, o_ref, acc_ref, *, n_nodes):
    # Fallback for very large N*D: reduce node tiles first, one small matmul
    # at the end.  x_ref: (TB, TN, D); acc_ref: (TB, D) f32 partial node sums.
    k = pl.program_id(1)

    @pl.when(k == 0)
    def _():
        acc_ref[...] = jnp.zeros_like(acc_ref)

    acc_ref[...] += jnp.sum(x_ref[...].astype(jnp.float32), axis=1)

    @pl.when(k == pl.num_programs(1) - 1)
    def _():
        h = jnp.dot(acc_ref[...], w_ref[...].astype(jnp.float32),
                    preferred_element_type=jnp.float32)
        o_ref[...] = (h + float(n_nodes) * b_ref[...].astype(jnp.float32)
                      ).astype(o_ref.dtype)


# --------------------------------------------------------------------------
# Tile selection
# --------------------------------------------------------------------------
def _pick_flat_ktile(N, D, F, x_it, w_it):
    """Largest TK = c*D (c | N) usable by the lane-dense flat path, or None.

    TK == K is always layout-legal (block == full dim); smaller chunks must be
    a multiple of 128 lanes and must divide K exactly (a partial K tile would
    add garbage contributions into valid output rows)."""
    K = N * D
    f_pad = _round_up(F, _LANE)
    for c in range(N, 0, -1):
        if N % c:
            continue
        tk = c * D
        if tk != K and tk % _LANE:
            continue
        w_bytes = _round_up(tk, _SUBLANE) * f_pad * w_it
        x_min_bytes = 2 * _SUBLANE * _round_up(tk, _LANE) * x_it
        if w_bytes <= _W_TILE_BUDGET and x_min_bytes <= _X_STREAM_BUDGET:
            return tk
    return None


def _pick_node_tile(N, D, x_it):
    """Node tile TN for the reduce-first fallback: divisor of N, sublane-aligned."""
    d_pad = _round_up(D, _LANE)
    for tn in range(N, 0, -1):
        if N % tn:
            continue
        if tn != N and tn % _SUBLANE:
            continue
        if 2 * _SUBLANE * tn * d_pad * x_it <= _X_STREAM_BUDGET:
            return tn
    # TODO(synk): no divisor of N fits the stream budget (pathological N);
    # fall back to a single full-N tile and rely on the vmem_limit headroom.
    return N


def _pick_batch_tile(B, row_bytes):
    """Batch-tile rows: no artificial 128 cap; sized so the double-buffered x
    tile stays within the stream budget; keeps >= 2 grid steps on the
    'parallel' batch axis (v7x has 2 TensorCores) whenever B allows it."""
    if B <= _SUBLANE:
        return B                          # block == full batch dim
    max_rows = max(_SUBLANE,
                   (_X_STREAM_BUDGET // (2 * row_bytes)) // _SUBLANE * _SUBLANE)
    tb = min((B // _SUBLANE) * _SUBLANE, max_rows)
    half = _round_up(-(-B // 2), _SUBLANE)
    tb = min(tb, half)
    return max(_SUBLANE, tb)


# --------------------------------------------------------------------------
# Wrapper
# --------------------------------------------------------------------------
def representation_forward(x, w, b):
    """x: [B, N, D] node features, w: [D, F], b: [1, F] -> [B, F]."""
    B, N, D = x.shape
    F = w.shape[1]
    K = N * D
    x_it = jnp.dtype(x.dtype).itemsize
    w_it = jnp.dtype(w.dtype).itemsize
    out_dtype = jnp.result_type(x.dtype, w.dtype)
    out_it = jnp.dtype(out_dtype).itemsize

    tk = _pick_flat_ktile(N, D, F, x_it, w_it)

    if tk is not None:
        # ---- lane-dense flat path -------------------------------------
        c = tk // D
        nk = K // tk
        x_in = x.reshape(B, K)                    # metadata-only reshape
        w_in = jnp.tile(w, (c, 1))                # (TK, F) node-replicated tile
        row_bytes = tk * x_it
        TB = _pick_batch_tile(B, row_bytes)
        nb = -(-B // TB)
        B_pad = nb * TB

        kernel = functools.partial(_flat_kernel, n_nodes=N)
        in_specs = [
            pl.BlockSpec((TB, tk), lambda i, k: (i, k)),
            pl.BlockSpec((tk, F), lambda i, k: (0, 0)),   # VMEM-resident
            pl.BlockSpec((1, F), lambda i, k: (0, 0)),
        ]
        scratch = [pltpu.VMEM((TB, F), jnp.float32)]
        operands = (x_in, w_in, b)
        est = (2 * TB * _round_up(tk, _LANE) * x_it
               + 2 * _round_up(tk, _SUBLANE) * _round_up(F, _LANE) * w_it
               + 2 * TB * _round_up(F, _LANE) * out_it
               + _round_up(TB, _SUBLANE) * _round_up(F, _LANE) * 4)
    else:
        # ---- reduce-first fallback (very large N*D) ---------------------
        tn = _pick_node_tile(N, D, x_it)
        nk = -(-N // tn)
        row_bytes = tn * _round_up(D, _LANE) * x_it
        TB = _pick_batch_tile(B, row_bytes)
        nb = -(-B // TB)
        B_pad = nb * TB

        kernel = functools.partial(_reduce_kernel, n_nodes=N)
        in_specs = [
            pl.BlockSpec((TB, tn, D), lambda i, k: (i, k, 0)),
            pl.BlockSpec((D, F), lambda i, k: (0, 0)),
            pl.BlockSpec((1, F), lambda i, k: (0, 0)),
        ]
        scratch = [pltpu.VMEM((TB, D), jnp.float32)]
        operands = (x, w, b)
        est = (2 * TB * tn * _round_up(D, _LANE) * x_it
               + 2 * _round_up(D, _SUBLANE) * _round_up(F, _LANE) * w_it
               + 2 * TB * _round_up(F, _LANE) * out_it
               + _round_up(TB, _SUBLANE) * _round_up(D, _LANE) * 4)

    # Explicit scoped-VMEM limit (v5e default is only 16 MiB), with headroom.
    vmem_limit = int(min(64 << 20, max(16 << 20, 2 * est + (2 << 20))))

    out = pl.pallas_call(
        kernel,
        out_shape=jax.ShapeDtypeStruct((B_pad, F), out_dtype),
        grid_spec=pltpu.PrefetchScalarGridSpec(
            num_scalar_prefetch=0,
            grid=(nb, nk),
            in_specs=in_specs,
            out_specs=pl.BlockSpec((TB, F), lambda i, k: (i, 0)),
            scratch_shapes=scratch,
        ),
        compiler_params=pltpu.CompilerParams(
            dimension_semantics=("parallel", "arbitrary"),
            vmem_limit_bytes=vmem_limit,
        ),
    )(*operands)

    # Invariant: rows >= B of `out` may contain garbage from the partial final
    # batch block (no input padding); the kernel never mixes batch rows, so
    # slicing them off is sufficient.
    return out[:B]


def reference_forward(x, w, b):
    h = jnp.einsum("bnd,df->bnf", x.astype(jnp.float32), w.astype(jnp.float32))
    return jnp.sum(h + b.astype(jnp.float32), axis=1)


if __name__ == "__main__":
    key = jax.random.PRNGKey(0)
    k_x, k_w, k_b = jax.random.split(key, 3)

    B, N, D, F = 2, 8, 32, 16   # batch of 2 graphs, 8 nodes, 32 feats -> 16-dim rep
    x = jax.random.normal(k_x, (B, N, D), dtype=jnp.float32)
    w = jax.random.normal(k_w, (D, F), dtype=jnp.float32) * 0.1
    b = jax.random.normal(k_b, (1, F), dtype=jnp.float32) * 0.1

    out = jax.block_until_ready(representation_forward(x, w, b))
    ref = reference_forward(x, w, b)
    assert out.shape == (B, F)
    assert jnp.allclose(out, ref, atol=1e-3, rtol=1e-3), "mismatch vs reference"

    # Exercise batch tiling with a partial final block (no input padding) and
    # a multi-step 'parallel' batch axis.
    B2 = 20
    x2 = jax.random.normal(k_x, (B2, N, D), dtype=jnp.float32)
    out2 = jax.block_until_ready(representation_forward(x2, w, b))
    ref2 = reference_forward(x2, w, b)
    assert out2.shape == (B2, F)
    assert jnp.allclose(out2, ref2, atol=1e-3, rtol=1e-3), "mismatch (tiled batch)"

    # bf16 node features (half the HBM traffic); f32 accumulation in-kernel.
    out_bf = jax.block_until_ready(representation_forward(x.astype(jnp.bfloat16), w, b))
    ref_bf = reference_forward(x.astype(jnp.bfloat16), w, b)
    assert jnp.allclose(out_bf, ref_bf, atol=5e-2, rtol=5e-2), "mismatch (bf16)"

    print("KERNEL_OK")
</pallas_src>

<mosaic_0001>
module attributes {stable_mosaic.version = 11 : i64} {
  func.func @_flat_kernel(%arg0: i32, %arg1: i32, %arg2: memref<2x256xf32, #tpu.memory_space<vmem>>, %arg3: memref<256x16xf32, #tpu.memory_space<vmem>>, %arg4: memref<1x16xf32, #tpu.memory_space<vmem>>, %arg5: memref<2x16xf32, #tpu.memory_space<vmem>>, %arg6: memref<2x16xf32, #tpu.memory_space<vmem>>) attributes {dimension_semantics = [#tpu.dimension_semantics<parallel>, #tpu.dimension_semantics<arbitrary>], iteration_bounds = array<i64: 1, 1>, scalar_prefetch = 0 : i64, scratch_operands = 1 : i64, tpu.core_type = #tpu.core_type<tc>, window_params = [{transform_indices = @transform_0, window_bounds = array<i64: 2, 256>}, {pipeline_mode = #tpu.pipeline_mode<synchronous>, transform_indices = @transform_1, window_bounds = array<i64: 256, 16>}, {pipeline_mode = #tpu.pipeline_mode<synchronous>, transform_indices = @transform_2, window_bounds = array<i64: 1, 16>}, {transform_indices = @transform_3, window_bounds = array<i64: 2, 16>}]} {
    %c0_i32 = arith.constant 0 : i32
    %0 = arith.cmpi eq, %arg1, %c0_i32 : i32
    %1 = arith.extui %0 : i1 to i32
    %c0_i32_0 = arith.constant 0 : i32
    %2 = arith.cmpi ne, %1, %c0_i32_0 : i32
    scf.if %2 {
      %cst_10 = arith.constant 0.000000e+00 : f32
      %12 = vector.broadcast %cst_10 : f32 to vector<2x16xf32>
      %c0_11 = arith.constant 0 : index
      %c0_12 = arith.constant 0 : index
      %13 = vector.load %arg6[%c0_11, %c0_12] : memref<2x16xf32, #tpu.memory_space<vmem>>, vector<2x16xf32>
      tpu.vector_store %arg6[%c0_11, %c0_12], %12 {strides = array<i32>} : memref<2x16xf32, #tpu.memory_space<vmem>>, vector<2x16xf32>,
    } else {
    }
    %c0 = arith.constant 0 : index
    %c0_1 = arith.constant 0 : index
    %3 = vector.load %arg6[%c0, %c0_1] : memref<2x16xf32, #tpu.memory_space<vmem>>, vector<2x16xf32>
    %c0_2 = arith.constant 0 : index
    %c0_3 = arith.constant 0 : index
    %4 = vector.load %arg2[%c0_2, %c0_3] : memref<2x256xf32, #tpu.memory_space<vmem>>, vector<2x256xf32>
    %c0_4 = arith.constant 0 : index
    %c0_5 = arith.constant 0 : index
    %5 = vector.load %arg3[%c0_4, %c0_5] : memref<256x16xf32, #tpu.memory_space<vmem>>, vector<256x16xf32>
    %cst = arith.constant dense<0.000000e+00> : vector<2x16xf32>
    %6 = tpu.matmul %4, %5, %cst {dimension_numbers = #tpu.dot_dimension_numbers<[1], [0], [0], [1], [0, 0, 1, 1], [], []>} : vector<2x256xf32>, vector<256x16xf32>, vector<2x16xf32> -> vector<2x16xf32>
    %7 = arith.addf %3, %6 : vector<2x16xf32>
    %c0_6 = arith.constant 0 : index
    %c0_7 = arith.constant 0 : index
    %8 = vector.load %arg6[%c0_6, %c0_7] : memref<2x16xf32, #tpu.memory_space<vmem>>, vector<2x16xf32>
    tpu.vector_store %arg6[%c0_6, %c0_7], %7 {strides = array<i32>} : memref<2x16xf32, #tpu.memory_space<vmem>>, vector<2x16xf32>,
    %c0_i32_8 = arith.constant 0 : i32
    %9 = arith.cmpi eq, %arg1, %c0_i32_8 : i32
    %10 = arith.extui %9 : i1 to i32
    %c0_i32_9 = arith.constant 0 : i32
    %11 = arith.cmpi ne, %10, %c0_i32_9 : i32
    scf.if %11 {
      %c0_10 = arith.constant 0 : index
      %c0_11 = arith.constant 0 : index
      %12 = vector.load %arg6[%c0_10, %c0_11] : memref<2x16xf32, #tpu.memory_space<vmem>>, vector<2x16xf32>
      %c0_12 = arith.constant 0 : index
      %c0_13 = arith.constant 0 : index
      %13 = vector.load %arg4[%c0_12, %c0_13] : memref<1x16xf32, #tpu.memory_space<vmem>>, vector<1x16xf32>
      %cst_14 = arith.constant 8.000000e+00 : f32
      %14 = vector.broadcast %cst_14 : f32 to vector<1x16xf32>
      %15 = arith.mulf %14, %13 : vector<1x16xf32>
      %16 = vector.broadcast %15 : vector<1x16xf32> to vector<2x16xf32>
      %17 = arith.addf %12, %16 : vector<2x16xf32>
      %c0_15 = arith.constant 0 : index
      %c0_16 = arith.constant 0 : index
      %18 = vector.load %arg5[%c0_15, %c0_16] : memref<2x16xf32, #tpu.memory_space<vmem>>, vector<2x16xf32>
      tpu.vector_store %arg5[%c0_15, %c0_16], %17 {strides = array<i32>} : memref<2x16xf32, #tpu.memory_space<vmem>>, vector<2x16xf32>,
    } else {
    }
    return
  }
  func.func @transform_0(%arg0: i32, %arg1: i32) -> (i32, i32) {
    %c0_i32 = arith.constant 0 : i32
    return %arg0, %arg1 : i32, i32
  }
  func.func @transform_1(%arg0: i32, %arg1: i32) -> (i32, i32) {
    %c0_i32 = arith.constant 0 : i32
    %c0_i32_0 = arith.constant 0 : i32
    %c0_i32_1 = arith.constant 0 : i32
    return %c0_i32, %c0_i32_0 : i32, i32
  }
  func.func @transform_2(%arg0: i32, %arg1: i32) -> (i32, i32) {
    %c0_i32 = arith.constant 0 : i32
    %c0_i32_0 = arith.constant 0 : i32
    %c0_i32_1 = arith.constant 0 : i32
    return %c0_i32, %c0_i32_0 : i32, i32
  }
  func.func @transform_3(%arg0: i32, %arg1: i32) -> (i32, i32) {
    %c0_i32 = arith.constant 0 : i32
    %c0_i32_0 = arith.constant 0 : i32
    return %arg0, %c0_i32 : i32, i32
  }
}

</mosaic_0001>

<bundles_post_ra>
// kernel: tpu_custom_call.1
= control target key start
LH: loop header
LB: loop body
LE: loop exit
PB: predicated region body
PF: predicated region fallthrough
CT: control target
= control target key end

     0   :  { %s289_s0 = inlined_call_operand.vmem [shape: f32[2,256], index: 0, kind: input, shape index: {}]   ;;  %s290_s1 = inlined_call_operand.vmem [shape: f32[256,16], index: 1, kind: input, shape index: {}]   ;;  %s291_s2 = inlined_call_operand.vmem [shape: f32[1,16], index: 2, kind: input, shape index: {}]   ;;  %s292_s3 = inlined_call_operand.hbm [shape: f32[2,16], index: 3, kind: output, shape index: {}]  }
   0x1   :  { %v38_v0 = vld [vmem:[%s290_s1 + $0x78] sm:$0xff]  ;;  %v37_v2 = vld [vmem:[%s290_s1 + $0x70] sm:$0xff]  ;;  %v36_v4 = vld [vmem:[%s290_s1 + $0x68] sm:$0xff] }
   0x2   :  { %v54_v1 = vld [vmem:[%s290_s1 + $0xf8] sm:$0xff]  ;;  %61 = vmatpush.msra.mxu0 %v38_v0  ;;  %v53_v3 = vld [vmem:[%s290_s1 + $0xf0] sm:$0xff]  ;;  %v52_v5 = vld [vmem:[%s290_s1 + $0xe8] sm:$0xff] }
   0x3   :  { %81 = vmatpush.msra.mxu1 %v54_v1  ;;  %v35_v6 = vld [vmem:[%s290_s1 + $0x60] sm:$0xff]  ;;  %v34_v8 = vld [vmem:[%s290_s1 + $0x58] sm:$0xff]  ;;  %v33_v10 = vld [vmem:[%s290_s1 + $0x50] sm:$0xff] }
   0x4   :  { %62 = vmatpush.msra.mxu0 %v37_v2  ;;  %v51_v7 = vld [vmem:[%s290_s1 + $0xe0] sm:$0xff]  ;;  %v50_v9 = vld [vmem:[%s290_s1 + $0xd8] sm:$0xff]  ;;  %v49_v11 = vld [vmem:[%s290_s1 + $0xd0] sm:$0xff] }
   0x5   :  { %82 = vmatpush.msra.mxu1 %v53_v3  ;;  %v32_v12 = vld [vmem:[%s290_s1 + $0x48] sm:$0xff]  ;;  %v22_v14 = vld [vmem:[%s289_s0] sm:$0xf] }
   0x6   :  { %63 = vmatpush.msra.mxu0 %v36_v4  ;;  %v48_v13 = vld [vmem:[%s290_s1 + $0xc8] sm:$0xff]  ;;  %56 = vst [vmem:[#allocation1] ss:$4 sm:$0xff] %v22_v14 }
   0x7   :  { %83 = vmatpush.msra.mxu1 %v52_v5 }
   0x8   :  { %64 = vmatpush.msra.mxu0 %v35_v6 }
   0x9   :  { %84 = vmatpush.msra.mxu1 %v51_v7 }
   0xa   :  { %65 = vmatpush.msra.mxu0 %v34_v8 }
   0xb   :  { %85 = vmatpush.msra.mxu1 %v50_v9 }
   0xc   :  { %66 = vmatpush.msra.mxu0 %v33_v10 }
   0xd   :  { %86 = vmatpush.msra.mxu1 %v49_v11 }
   0xe   :  { %8 = vsyncpa [#allocation4], 0  ;;  %v31_v15 = vld [vmem:[%s290_s1 + $0x40] sm:$0xff]  ;;  %67 = vmatpush.msra.mxu0 %v32_v12  ;;  %v30_v17 = vld [vmem:[%s290_s1 + $0x38] sm:$0xff]  ;;  %vm19_vm0 = vcmask 123904   ;;  %v159_v35 = vmov 0.0  }
   0xf   :  { %v47_v16 = vld [vmem:[%s290_s1 + $0xc0] sm:$0xff]  ;;  %87 = vmatpush.msra.mxu1 %v48_v13  ;;  %v46_v18 = vld [vmem:[%s290_s1 + $0xb8] sm:$0xff]  ;;  %v29_v19 = vld [vmem:[%s290_s1 + $0x30] sm:$0xff]  ;;  %20 = vst.msk [vmem:[#allocation2] sm:$0x3] %vm19_vm0, %v159_v35  ;;  %s122_s27 = sshll.u32 %s292_s3, 4  ;;  %s123_s27 = int_to_ptr.hbm [resolvable:$true] %s122_s27 }
  0x10   :  { %68 = vmatpush.msra.mxu0 %v31_v15  ;;  %v45_v20 = vld [vmem:[%s290_s1 + $0xb0] sm:$0xff]  ;;  %v28_v21 = vld [vmem:[%s290_s1 + $0x28] sm:$0xff]  ;;  %v27_v23 = vld [vmem:[%s290_s1 + $0x20] sm:$0xff] }
  0x11   :  { %88 = vmatpush.msra.mxu1 %v47_v16  ;;  %v44_v22 = vld [vmem:[%s290_s1 + $0xa8] sm:$0xff]  ;;  %v43_v24 = vld [vmem:[%s290_s1 + $0xa0] sm:$0xff]  ;;  %v26_v25 = vld [vmem:[%s290_s1 + $0x18] sm:$0xff] }
  0x12   :  { %69 = vmatpush.msra.mxu0 %v30_v17  ;;  %v42_v26 = vld [vmem:[%s290_s1 + $0x98] sm:$0xff]  ;;  %v25_v27 = vld [vmem:[%s290_s1 + $0x10] sm:$0xff]  ;;  %v24_v29 = vld [vmem:[%s290_s1 + $0x8] sm:$0xff] }
  0x13   :  { %89 = vmatpush.msra.mxu1 %v46_v18  ;;  %v41_v28 = vld [vmem:[%s290_s1 + $0x90] sm:$0xff]  ;;  %v40_v30 = vld [vmem:[%s290_s1 + $0x88] sm:$0xff]  ;;  %v23_v31 = vld [vmem:[%s290_s1] sm:$0xff] }
  0x14   :  { %70 = vmatpush.msra.mxu0 %v29_v19  ;;  %v39_v32 = vld [vmem:[%s290_s1 + $0x80] sm:$0xff]  ;;  %v58_v34 = vld.sshfl [vmem:[#allocation1 + $0x8] sm:$0xff pattern:$0x73625140]  ;;  %s160_s1 = smov [#allocation3]  }
  0x15   :  { %90 = vmatpush.msra.mxu1 %v45_v20  ;;  %v57_v33 = vld.sshfl [vmem:[#allocation1] sm:$0xff pattern:$0x73625140]  ;;  %s120_s24 = sshll.u32 %s160_s1, 4  ;;  %s121_s24 = int_to_ptr.vmem [resolvable:$true] %s120_s24 }
  0x16   :  { %71 = vmatpush.msra.mxu0 %v28_v21  ;;  %v21_v37 = vld [vmem:[#allocation2] sm:$0x3]  ;;  %v108_v40 = vld [vmem:[%s291_s2] sm:$0x1] }
  0x17   :  { %91 = vmatpush.msra.mxu1 %v44_v22  ;;  %v109_v42 = vmul.f32 8.0, %v108_v40 }
  0x18   :  { %72 = vmatpush.msra.mxu0 %v27_v23 }
  0x19   :  { %92 = vmatpush.msra.mxu1 %v43_v24  ;;  %v111_v43 = vperm.slane %v109_v42, 0 }
  0x1a   :  { %73 = vmatpush.msra.mxu0 %v26_v25 }
  0x1b   :  { %93 = vmatpush.msra.mxu1 %v42_v26 }
  0x1c   :  { %74 = vmatpush.msra.mxu0 %v25_v27 }
  0x1d   :  { %94 = vmatpush.msra.mxu1 %v41_v28 }
  0x1e   :  { %75 = vmatpush.msra.mxu0 %v24_v29 }
  0x1f   :  { %95 = vmatpush.msra.mxu1 %v40_v30 }
  0x20   :  { %76 = vmatpush.msra.mxu0 %v23_v31 }
  0x21   :  { %96 = vmatpush.msra.mxu1 %v39_v32  ;;  %77 = vmatmul.f32.vlgmr.msra.gmra.mxu0 %v57_v33 }
  0x22   :  { %97 = vmatmul.f32.vlgmr.msra.gmra.mxu1 %v58_v34 }
  0x9e   :  { %v78_v36 = vpop.f32.mrf.mxu0 }
  0x9f   :  { %v98_v38 = vpop.f32.mrf.mxu1 }
  0xa0   :  { %v99_v39 = vadd.f32 %v98_v38, %v78_v36 }
  0xa2   :  { %v101_v41 = vadd.f32 %v99_v39, %v21_v37 }
  0xa4   :  { %103 = vst.msk [vmem:[#allocation2] sm:$0x3] %vm19_vm0, %v101_v41 }
  0xab   :  { %v107_v44 = vld [vmem:[#allocation2] sm:$0x3] }
  0xac   :  { %v113_v45 = vadd.f32 %v111_v43, %v107_v44 }
  0xae   :  { %114 = vst.msk [vmem:[#allocation3] sm:$0x3] %vm19_vm0, %v113_v45 }
  0xaf   :  { %125 = dma.vmem_to_hbm [thread:$0]  %s121_s24, 32, %s123_s27, [#allocation4]  }
  0xb0   :  { %157 = dma.done.wait [#allocation4], 32  }
  0xb1   :  { %158 = vsyncadd [#allocation4], 4294967264 }
  0xb2   :  { %130 = vsyncpa [#allocation4], 1 }

</bundles_post_ra>
